<compile_context>
chip_gen: v6e
topology: v6e:2x2x1
jax: 0.10.0
libtpu: 0.0.40
codegen_flags: <defaults>
</compile_context>

<pallas_src>
import functools

import jax
import jax.numpy as jnp
from jax.experimental import pallas as pl
from jax.experimental.pallas import tpu as pltpu


def shotcol_mlp_kernel(x_ref, w1_ref, b1_ref, w2_ref, b2_ref, w3t_ref, b3t_ref,
                       o_ref, *, win, half):
    """Fused 3-layer MLP on one batch tile.

    x_ref : (TB, S, C)  f32     w1_ref : (2*win, C, H1)  bf16   b1_ref : (1, H1)  f32
    w2_ref: (H1, H2)    bf16    b2_ref : (1, H2)         f32
    w3t_ref:(O, H2)     bf16    b3t_ref: (O, 1)          f32
    o_ref : (O, TB)     f32     (batch on lanes -> lane-dense stores)
    """
    nwin = 2 * win

    # ---- layer 1: contract over (window position, channel) without flatten ----
    # acc[b, h] = sum_t sum_c x[b, half-win+t, c] * W1[t*C + c, h]
    x0 = x_ref[:, half - win, :].astype(jnp.bfloat16)              # (TB, C)
    acc = jnp.dot(x0, w1_ref[0], preferred_element_type=jnp.float32)
    for t in range(1, nwin):                                       # static unroll
        xt = x_ref[:, half - win + t, :].astype(jnp.bfloat16)
        acc = acc + jnp.dot(xt, w1_ref[t], preferred_element_type=jnp.float32)
    h1 = jnp.maximum(acc + b1_ref[...], 0.0)                       # ReLU (f32)
    # dropout(p=0.5) == identity in eval mode

    # ---- layer 2 ----
    h2 = jnp.dot(h1.astype(jnp.bfloat16), w2_ref[...],
                 preferred_element_type=jnp.float32) + b2_ref[...]
    h2 = jnp.maximum(h2, 0.0)
    # dropout(p=0.5) == identity in eval mode

    # ---- layer 3, transposed orientation so batch lands on lanes ----
    # (O, TB) = w3t (O, H2) . h2^T  -- NT dot_general (contract dim 1 of both)
    logit_t = jax.lax.dot_general(
        w3t_ref[...], h2.astype(jnp.bfloat16),
        dimension_numbers=(((1,), (1,)), ((), ())),
        preferred_element_type=jnp.float32) + b3t_ref[...]
    o_ref[...] = jax.nn.sigmoid(logit_t)


def _xavier_uniform(key, fan_in, fan_out):
    # matches torch.nn.init.xavier_uniform_ (gain=1); stored as (in, out)
    limit = (6.0 / (fan_in + fan_out)) ** 0.5
    return jax.random.uniform(key, (fan_in, fan_out), jnp.float32,
                              minval=-limit, maxval=limit)


def make_shotcol_params(key, in_ch, hid_ch, out_ch, win_size,
                        weight_dtype=jnp.bfloat16):
    """Kernel-ready parameter layout (weights bf16, biases f32)."""
    f_in = in_ch * win_size * 2
    k1, k2, k3 = jax.random.split(key, 3)
    w1 = _xavier_uniform(k1, f_in, hid_ch).astype(weight_dtype)
    w2 = _xavier_uniform(k2, hid_ch, hid_ch // 2).astype(weight_dtype)
    w3 = _xavier_uniform(k3, hid_ch // 2, out_ch).astype(weight_dtype)
    return {
        # (2*win, C, H1): lets the kernel contract window/channel without reshape
        "w1": w1.reshape(2 * win_size, in_ch, hid_ch),
        "b1": jnp.zeros((1, hid_ch), jnp.float32),
        "w2": w2,
        "b2": jnp.zeros((1, hid_ch // 2), jnp.float32),
        # torch-native (out, in) layout -> NT matmul produces (out, TB) directly
        "w3t": w3.T,
        "b3t": jnp.zeros((out_ch, 1), jnp.float32),
    }


def _pick_batch_tile(batch, seq, in_ch, itemsize):
    """Batch-tile rows: == B for small batches (output lane dim == full dim),
    128/256/512 (MXU-row multiples, VMEM-bounded x block) for large batches."""
    if batch <= 128:
        return batch
    budget = 4 << 20  # per-block x bytes (Pallas double-buffers it)
    for tb in (512, 256, 128):
        if tb <= batch and tb * seq * in_ch * itemsize <= budget:
            return tb
    return 128


def shotcol_forward(x, params, win_size):
    """x: (batch, seq, in_ch) float32. Returns sigmoid scores, squeezed like torch."""
    batch, seq, in_ch = x.shape
    half = seq // 2

    w1, b1 = params["w1"], params["b1"]
    w2, b2 = params["w2"], params["b2"]
    w3t, b3t = params["w3t"], params["b3t"]
    hid = w1.shape[2]
    hid2 = w2.shape[1]
    out_ch = w3t.shape[0]

    tb = _pick_batch_tile(batch, seq, in_ch, x.dtype.itemsize)
    grid = (pl.cdiv(batch, tb),)

    kernel = functools.partial(shotcol_mlp_kernel, win=win_size, half=half)

    def full_spec(a):
        return pl.BlockSpec(a.shape, lambda i: (0,) * a.ndim)

    f_in = 2 * win_size * in_ch
    cost = pl.CostEstimate(
        flops=2 * batch * (f_in * hid + hid * hid2 + hid2 * out_ch),
        transcendentals=batch * out_ch,
        bytes_accessed=(x.size * x.dtype.itemsize
                        + sum(int(p.size) * p.dtype.itemsize for p in params.values())
                        + batch * out_ch * 4),
    )

    out_t = pl.pallas_call(
        kernel,
        out_shape=jax.ShapeDtypeStruct((out_ch, batch), jnp.float32),
        grid=grid,
        in_specs=[
            # batch-tiled activations; weights stay resident (constant index_map,
            # Pallas skips re-DMA when the block index does not change).
            pl.BlockSpec((tb, seq, in_ch), lambda i: (i, 0, 0)),
            full_spec(w1), full_spec(b1),
            full_spec(w2), full_spec(b2),
            full_spec(w3t), full_spec(b3t),
        ],
        out_specs=pl.BlockSpec((out_ch, tb), lambda i: (0, i)),
        compiler_params=pltpu.CompilerParams(
            dimension_semantics=("parallel",),
            vmem_limit_bytes=64 * 1024 * 1024),
        cost_estimate=cost,
    )(x, w1, b1, w2, b2, w3t, b3t)

    # back to module layout (batch, out_ch), then squeeze (matches torch .squeeze())
    return jnp.squeeze(out_t.T)


def shotcol_reference(x, params, win_size):
    """Pure-JAX reference with identical precision policy (bf16 matmuls, f32 acc)."""
    batch, seq, _ = x.shape
    half = seq // 2
    xw = x[:, half - win_size: half + win_size, :].reshape(batch, -1)
    xw = xw.astype(jnp.bfloat16)
    w1 = params["w1"].reshape(-1, params["w1"].shape[-1])
    h1 = jnp.maximum(
        jnp.dot(xw, w1, preferred_element_type=jnp.float32) + params["b1"], 0.0)
    h2 = jnp.maximum(
        jnp.dot(h1.astype(jnp.bfloat16), params["w2"],
                preferred_element_type=jnp.float32) + params["b2"], 0.0)
    logit = jnp.dot(h2.astype(jnp.bfloat16), params["w3t"].T,
                    preferred_element_type=jnp.float32) + params["b3t"].T
    return jnp.squeeze(jax.nn.sigmoid(logit))


if __name__ == "__main__":
    # small, module-consistent shapes: batch=2, seq=8, in_ch=32, hid_ch=32,
    # out_ch=1, win_size=3 -> linear_1 input = 32*3*2 = 192
    batch, seq, in_ch = 2, 8, 32
    hid_ch, out_ch, win = 32, 1, 3

    key = jax.random.PRNGKey(0)
    kx, kp = jax.random.split(key)
    x = jax.random.normal(kx, (batch, seq, in_ch), dtype=jnp.float32)
    params = make_shotcol_params(kp, in_ch, hid_ch, out_ch, win)

    y = jax.block_until_ready(shotcol_forward(x, params, win))
    y_ref = jax.block_until_ready(shotcol_reference(x, params, win))

    assert y.shape == y_ref.shape, (y.shape, y_ref.shape)
    assert jnp.allclose(y, y_ref, atol=1e-4, rtol=1e-4), \
        float(jnp.max(jnp.abs(y - y_ref)))

    print("KERNEL_OK")
</pallas_src>

<mosaic_0001>
module attributes {stable_mosaic.version = 11 : i64} {
  func.func @shotcol_mlp_kernel(%arg0: i32, %arg1: memref<2x8x32xf32, #tpu.memory_space<vmem>>, %arg2: memref<6x32x32xbf16, #tpu.memory_space<vmem>>, %arg3: memref<1x32xf32, #tpu.memory_space<vmem>>, %arg4: memref<32x16xbf16, #tpu.memory_space<vmem>>, %arg5: memref<1x16xf32, #tpu.memory_space<vmem>>, %arg6: memref<1x16xbf16, #tpu.memory_space<vmem>>, %arg7: memref<1x1xf32, #tpu.memory_space<vmem>>, %arg8: memref<1x2xf32, #tpu.memory_space<vmem>>) attributes {dimension_semantics = [#tpu.dimension_semantics<parallel>], iteration_bounds = array<i64: 1>, scalar_prefetch = 0 : i64, scratch_operands = 0 : i64, tpu.core_type = #tpu.core_type<tc>, window_params = [{transform_indices = @transform_0, window_bounds = array<i64: 2, 8, 32>}, {pipeline_mode = #tpu.pipeline_mode<synchronous>, transform_indices = @transform_1, window_bounds = array<i64: 6, 32, 32>}, {pipeline_mode = #tpu.pipeline_mode<synchronous>, transform_indices = @transform_2, window_bounds = array<i64: 1, 32>}, {pipeline_mode = #tpu.pipeline_mode<synchronous>, transform_indices = @transform_3, window_bounds = array<i64: 32, 16>}, {pipeline_mode = #tpu.pipeline_mode<synchronous>, transform_indices = @transform_4, window_bounds = array<i64: 1, 16>}, {pipeline_mode = #tpu.pipeline_mode<synchronous>, transform_indices = @transform_5, window_bounds = array<i64: 1, 16>}, {pipeline_mode = #tpu.pipeline_mode<synchronous>, transform_indices = @transform_6, window_bounds = array<i64: 1, 1>}, {transform_indices = @transform_7, window_bounds = array<i64: 1, 2>}]} {
    %c0 = arith.constant 0 : index
    %c1 = arith.constant 1 : index
    %c0_0 = arith.constant 0 : index
    %0 = vector.load %arg1[%c0, %c1, %c0_0] : memref<2x8x32xf32, #tpu.memory_space<vmem>>, vector<2x1x32xf32>
    %1 = vector.shape_cast %0 : vector<2x1x32xf32> to vector<2x32xf32>
    %2 = arith.truncf %1 : vector<2x32xf32> to vector<2x32xbf16>
    %c0_1 = arith.constant 0 : index
    %c0_2 = arith.constant 0 : index
    %c0_3 = arith.constant 0 : index
    %3 = vector.load %arg2[%c0_1, %c0_2, %c0_3] : memref<6x32x32xbf16, #tpu.memory_space<vmem>>, vector<1x32x32xbf16>
    %4 = vector.shape_cast %3 : vector<1x32x32xbf16> to vector<32x32xbf16>
    %cst = arith.constant dense<0.000000e+00> : vector<2x32xf32>
    %5 = tpu.matmul %2, %4, %cst {dimension_numbers = #tpu.dot_dimension_numbers<[1], [0], [0], [1], [0, 0, 1, 1], [], []>} : vector<2x32xbf16>, vector<32x32xbf16>, vector<2x32xf32> -> vector<2x32xf32>
    %c0_4 = arith.constant 0 : index
    %c2 = arith.constant 2 : index
    %c0_5 = arith.constant 0 : index
    %6 = vector.load %arg1[%c0_4, %c2, %c0_5] : memref<2x8x32xf32, #tpu.memory_space<vmem>>, vector<2x1x32xf32>
    %7 = vector.shape_cast %6 : vector<2x1x32xf32> to vector<2x32xf32>
    %8 = arith.truncf %7 : vector<2x32xf32> to vector<2x32xbf16>
    %c1_6 = arith.constant 1 : index
    %c0_7 = arith.constant 0 : index
    %c0_8 = arith.constant 0 : index
    %9 = vector.load %arg2[%c1_6, %c0_7, %c0_8] : memref<6x32x32xbf16, #tpu.memory_space<vmem>>, vector<1x32x32xbf16>
    %10 = vector.shape_cast %9 : vector<1x32x32xbf16> to vector<32x32xbf16>
    %cst_9 = arith.constant dense<0.000000e+00> : vector<2x32xf32>
    %11 = tpu.matmul %8, %10, %cst_9 {dimension_numbers = #tpu.dot_dimension_numbers<[1], [0], [0], [1], [0, 0, 1, 1], [], []>} : vector<2x32xbf16>, vector<32x32xbf16>, vector<2x32xf32> -> vector<2x32xf32>
    %12 = arith.addf %5, %11 : vector<2x32xf32>
    %c0_10 = arith.constant 0 : index
    %c3 = arith.constant 3 : index
    %c0_11 = arith.constant 0 : index
    %13 = vector.load %arg1[%c0_10, %c3, %c0_11] : memref<2x8x32xf32, #tpu.memory_space<vmem>>, vector<2x1x32xf32>
    %14 = vector.shape_cast %13 : vector<2x1x32xf32> to vector<2x32xf32>
    %15 = arith.truncf %14 : vector<2x32xf32> to vector<2x32xbf16>
    %c2_12 = arith.constant 2 : index
    %c0_13 = arith.constant 0 : index
    %c0_14 = arith.constant 0 : index
    %16 = vector.load %arg2[%c2_12, %c0_13, %c0_14] : memref<6x32x32xbf16, #tpu.memory_space<vmem>>, vector<1x32x32xbf16>
    %17 = vector.shape_cast %16 : vector<1x32x32xbf16> to vector<32x32xbf16>
    %cst_15 = arith.constant dense<0.000000e+00> : vector<2x32xf32>
    %18 = tpu.matmul %15, %17, %cst_15 {dimension_numbers = #tpu.dot_dimension_numbers<[1], [0], [0], [1], [0, 0, 1, 1], [], []>} : vector<2x32xbf16>, vector<32x32xbf16>, vector<2x32xf32> -> vector<2x32xf32>
    %19 = arith.addf %12, %18 : vector<2x32xf32>
    %c0_16 = arith.constant 0 : index
    %c4 = arith.constant 4 : index
    %c0_17 = arith.constant 0 : index
    %20 = vector.load %arg1[%c0_16, %c4, %c0_17] : memref<2x8x32xf32, #tpu.memory_space<vmem>>, vector<2x1x32xf32>
    %21 = vector.shape_cast %20 : vector<2x1x32xf32> to vector<2x32xf32>
    %22 = arith.truncf %21 : vector<2x32xf32> to vector<2x32xbf16>
    %c3_18 = arith.constant 3 : index
    %c0_19 = arith.constant 0 : index
    %c0_20 = arith.constant 0 : index
    %23 = vector.load %arg2[%c3_18, %c0_19, %c0_20] : memref<6x32x32xbf16, #tpu.memory_space<vmem>>, vector<1x32x32xbf16>
    %24 = vector.shape_cast %23 : vector<1x32x32xbf16> to vector<32x32xbf16>
    %cst_21 = arith.constant dense<0.000000e+00> : vector<2x32xf32>
    %25 = tpu.matmul %22, %24, %cst_21 {dimension_numbers = #tpu.dot_dimension_numbers<[1], [0], [0], [1], [0, 0, 1, 1], [], []>} : vector<2x32xbf16>, vector<32x32xbf16>, vector<2x32xf32> -> vector<2x32xf32>
    %26 = arith.addf %19, %25 : vector<2x32xf32>
    %c0_22 = arith.constant 0 : index
    %c5 = arith.constant 5 : index
    %c0_23 = arith.constant 0 : index
    %27 = vector.load %arg1[%c0_22, %c5, %c0_23] : memref<2x8x32xf32, #tpu.memory_space<vmem>>, vector<2x1x32xf32>
    %28 = vector.shape_cast %27 : vector<2x1x32xf32> to vector<2x32xf32>
    %29 = arith.truncf %28 : vector<2x32xf32> to vector<2x32xbf16>
    %c4_24 = arith.constant 4 : index
    %c0_25 = arith.constant 0 : index
    %c0_26 = arith.constant 0 : index
    %30 = vector.load %arg2[%c4_24, %c0_25, %c0_26] : memref<6x32x32xbf16, #tpu.memory_space<vmem>>, vector<1x32x32xbf16>
    %31 = vector.shape_cast %30 : vector<1x32x32xbf16> to vector<32x32xbf16>
    %cst_27 = arith.constant dense<0.000000e+00> : vector<2x32xf32>
    %32 = tpu.matmul %29, %31, %cst_27 {dimension_numbers = #tpu.dot_dimension_numbers<[1], [0], [0], [1], [0, 0, 1, 1], [], []>} : vector<2x32xbf16>, vector<32x32xbf16>, vector<2x32xf32> -> vector<2x32xf32>
    %33 = arith.addf %26, %32 : vector<2x32xf32>
    %c0_28 = arith.constant 0 : index
    %c6 = arith.constant 6 : index
    %c0_29 = arith.constant 0 : index
    %34 = vector.load %arg1[%c0_28, %c6, %c0_29] : memref<2x8x32xf32, #tpu.memory_space<vmem>>, vector<2x1x32xf32>
    %35 = vector.shape_cast %34 : vector<2x1x32xf32> to vector<2x32xf32>
    %36 = arith.truncf %35 : vector<2x32xf32> to vector<2x32xbf16>
    %c5_30 = arith.constant 5 : index
    %c0_31 = arith.constant 0 : index
    %c0_32 = arith.constant 0 : index
    %37 = vector.load %arg2[%c5_30, %c0_31, %c0_32] : memref<6x32x32xbf16, #tpu.memory_space<vmem>>, vector<1x32x32xbf16>
    %38 = vector.shape_cast %37 : vector<1x32x32xbf16> to vector<32x32xbf16>
    %cst_33 = arith.constant dense<0.000000e+00> : vector<2x32xf32>
    %39 = tpu.matmul %36, %38, %cst_33 {dimension_numbers = #tpu.dot_dimension_numbers<[1], [0], [0], [1], [0, 0, 1, 1], [], []>} : vector<2x32xbf16>, vector<32x32xbf16>, vector<2x32xf32> -> vector<2x32xf32>
    %40 = arith.addf %33, %39 : vector<2x32xf32>
    %c0_34 = arith.constant 0 : index
    %c0_35 = arith.constant 0 : index
    %41 = vector.load %arg3[%c0_34, %c0_35] : memref<1x32xf32, #tpu.memory_space<vmem>>, vector<1x32xf32>
    %42 = vector.broadcast %41 : vector<1x32xf32> to vector<2x32xf32>
    %43 = arith.addf %40, %42 : vector<2x32xf32>
    %cst_36 = arith.constant 0.000000e+00 : f32
    %44 = vector.broadcast %cst_36 : f32 to vector<2x32xf32>
    %45 = arith.maximumf %43, %44 : vector<2x32xf32>
    %46 = arith.truncf %45 : vector<2x32xf32> to vector<2x32xbf16>
    %c0_37 = arith.constant 0 : index
    %c0_38 = arith.constant 0 : index
    %47 = vector.load %arg4[%c0_37, %c0_38] : memref<32x16xbf16, #tpu.memory_space<vmem>>, vector<32x16xbf16>
    %cst_39 = arith.constant dense<0.000000e+00> : vector<2x16xf32>
    %48 = tpu.matmul %46, %47, %cst_39 {dimension_numbers = #tpu.dot_dimension_numbers<[1], [0], [0], [1], [0, 0, 1, 1], [], []>} : vector<2x32xbf16>, vector<32x16xbf16>, vector<2x16xf32> -> vector<2x16xf32>
    %c0_40 = arith.constant 0 : index
    %c0_41 = arith.constant 0 : index
    %49 = vector.load %arg5[%c0_40, %c0_41] : memref<1x16xf32, #tpu.memory_space<vmem>>, vector<1x16xf32>
    %50 = vector.broadcast %49 : vector<1x16xf32> to vector<2x16xf32>
    %51 = arith.addf %48, %50 : vector<2x16xf32>
    %cst_42 = arith.constant 0.000000e+00 : f32
    %52 = vector.broadcast %cst_42 : f32 to vector<2x16xf32>
    %53 = arith.maximumf %51, %52 : vector<2x16xf32>
    %c0_43 = arith.constant 0 : index
    %c0_44 = arith.constant 0 : index
    %54 = vector.load %arg6[%c0_43, %c0_44] : memref<1x16xbf16, #tpu.memory_space<vmem>>, vector<1x16xbf16>
    %55 = arith.truncf %53 : vector<2x16xf32> to vector<2x16xbf16>
    %cst_45 = arith.constant dense<0.000000e+00> : vector<1x2xf32>
    %56 = tpu.matmul %54, %55, %cst_45 {dimension_numbers = #tpu.dot_dimension_numbers<[1], [1], [0], [0], [0, 0, 1, 0], [], []>} : vector<1x16xbf16>, vector<2x16xbf16>, vector<1x2xf32> -> vector<1x2xf32>
    %c0_46 = arith.constant 0 : index
    %c0_47 = arith.constant 0 : index
    %57 = vector.load %arg7[%c0_46, %c0_47] : memref<1x1xf32, #tpu.memory_space<vmem>>, vector<1x1xf32>
    %58 = vector.broadcast %57 : vector<1x1xf32> to vector<1x2xf32>
    %59 = arith.addf %56, %58 : vector<1x2xf32>
    %60 = arith.negf %59 : vector<1x2xf32>
    %61 = math.exp %60 : vector<1x2xf32>
    %cst_48 = arith.constant 1.000000e+00 : f32
    %62 = vector.broadcast %cst_48 : f32 to vector<1x2xf32>
    %63 = arith.addf %62, %61 : vector<1x2xf32>
    %64 = arith.divf %62, %63 : vector<1x2xf32>
    %c0_49 = arith.constant 0 : index
    %c0_50 = arith.constant 0 : index
    %65 = vector.load %arg8[%c0_49, %c0_50] : memref<1x2xf32, #tpu.memory_space<vmem>>, vector<1x2xf32>
    tpu.vector_store %arg8[%c0_49, %c0_50], %64 {strides = array<i32>} : memref<1x2xf32, #tpu.memory_space<vmem>>, vector<1x2xf32>,
    return
  }
  func.func @transform_0(%arg0: i32) -> (i32, i32, i32) {
    %c0_i32 = arith.constant 0 : i32
    %c0_i32_0 = arith.constant 0 : i32
    %c0_i32_1 = arith.constant 0 : i32
    return %arg0, %c0_i32, %c0_i32_0 : i32, i32, i32
  }
  func.func @transform_1(%arg0: i32) -> (i32, i32, i32) {
    %c0_i32 = arith.constant 0 : i32
    %c0_i32_0 = arith.constant 0 : i32
    %c0_i32_1 = arith.constant 0 : i32
    %c0_i32_2 = arith.constant 0 : i32
    return %c0_i32, %c0_i32_0, %c0_i32_1 : i32, i32, i32
  }
  func.func @transform_2(%arg0: i32) -> (i32, i32) {
    %c0_i32 = arith.constant 0 : i32
    %c0_i32_0 = arith.constant 0 : i32
    %c0_i32_1 = arith.constant 0 : i32
    return %c0_i32, %c0_i32_0 : i32, i32
  }
  func.func @transform_3(%arg0: i32) -> (i32, i32) {
    %c0_i32 = arith.constant 0 : i32
    %c0_i32_0 = arith.constant 0 : i32
    %c0_i32_1 = arith.constant 0 : i32
    return %c0_i32, %c0_i32_0 : i32, i32
  }
  func.func @transform_4(%arg0: i32) -> (i32, i32) {
    %c0_i32 = arith.constant 0 : i32
    %c0_i32_0 = arith.constant 0 : i32
    %c0_i32_1 = arith.constant 0 : i32
    return %c0_i32, %c0_i32_0 : i32, i32
  }
  func.func @transform_5(%arg0: i32) -> (i32, i32) {
    %c0_i32 = arith.constant 0 : i32
    %c0_i32_0 = arith.constant 0 : i32
    %c0_i32_1 = arith.constant 0 : i32
    return %c0_i32, %c0_i32_0 : i32, i32
  }
  func.func @transform_6(%arg0: i32) -> (i32, i32) {
    %c0_i32 = arith.constant 0 : i32
    %c0_i32_0 = arith.constant 0 : i32
    %c0_i32_1 = arith.constant 0 : i32
    return %c0_i32, %c0_i32_0 : i32, i32
  }
  func.func @transform_7(%arg0: i32) -> (i32, i32) {
    %c0_i32 = arith.constant 0 : i32
    %c0_i32_0 = arith.constant 0 : i32
    return %c0_i32, %arg0 : i32, i32
  }
}

</mosaic_0001>

<bundles_post_ra>
// kernel: tpu_custom_call.1
= control target key start
LH: loop header
LB: loop body
LE: loop exit
PB: predicated region body
PF: predicated region fallthrough
CT: control target
= control target key end

     0   :  { %s965_s0 = inlined_call_operand.vmem [shape: f32[2,8,32], index: 0, kind: input, shape index: {}]   ;;  %s966_s1 = inlined_call_operand.hbm [shape: bf16[6,32,32], index: 1, kind: input, shape index: {}]   ;;  %s967_s2 = inlined_call_operand.vmem [shape: f32[1,32], index: 2, kind: input, shape index: {}]   ;;  %s968_s3 = inlined_call_operand.vmem [shape: bf16[32,16], index: 3, kind: input, shape index: {}]   ;;  %s969_s4 = inlined_call_operand.vmem [shape: f32[1,16], index: 4, kind: input, shape index: {}]   ;;  %s970_s5 = inlined_call_operand.vmem [shape: bf16[1,16], index: 5, kind: input, shape index: {}]   ;;  %s971_s6 = inlined_call_operand.<no memory space> [shape: f32[1,1], index: 6, kind: input, shape index: {}]   ;;  %s972_s7 = inlined_call_operand.hbm [shape: f32[1,2], index: 7, kind: output, shape index: {}]  }
   0x1   :  { %v12_v0 = vstv %s971_s6 }
   0x2   :  { %13 = vst [vmem:[#allocation2] sm:$0x1] %v12_v0 }
   0x3   :  { %14 = vsyncpa [#allocation4], 0 }
   0x4   :  { %15 = vsyncpa [#allocation5], 0  ;;  %s814_s26 = smov [#allocation3]  }
   0x5   :  { %s23_s27 = sshll.u32 %s814_s26, 4  ;;  %s24_s27 = int_to_ptr.vmem [resolvable:$true] %s23_s27 }
   0x6   :  { %s778_s28 = scalar_lea.vmem %s24_s27, 1536  ;;  %p783_p1 = scmp.lt.s32.totalorder %s24_s27, %s24_s27 }
   0x7   :  { %p779_p0 = scmp.ne.s32.totalorder %s24_s27, %s778_s28  ;;  %p784_p2 = scmp.lt.s32.totalorder %s778_s28, %s778_s28 }
   0x9   :  { %p785_p3 = por %p784_p2, %p783_p1 }
   0xb   :  { %p786_p4 = pnand %p785_p3, %p779_p0 }
   0xd   :  { %789 = shalt.err (!%p786_p4)
}
   0xe   :  { %s815_s29 = smov 64   ;;  %s816_s30 = smov 4  }
   0xf   :  { %29 = dma.hbm_to_vmem [thread:$0]  %s966_s1, 1536, %s24_s27, [#allocation4], %s815_s29, %s815_s29, %s816_s30  }
  0x10   :  { %810 = dma.done.wait [#allocation4], 1536  }
  0x11   :  { %811 = vsyncadd [#allocation4], 4294965760  ;;  %v817_v1 = vmov 0.0   ;;  %vm818_vm0 = vmmov 0   ;;  %v752_v2 = vld [vmem:[#allocation3 + $0x18] sm:$0xff]   ;;  %v753_v3 = vld [vmem:[#allocation3 + $0x8] sm:$0xff]  }
  0x12   :  { %682 = vmatprep.subr.bf16.mxu0 %v817_v1  ;;  %690 = vmatprep.subr.bf16.mxu1 %v817_v1  ;;  %v754_v4 = vld [vmem:[#allocation3 + $0x10] sm:$0xff]   ;;  %v755_v5 = vld [vmem:[#allocation3] sm:$0xff]   ;;  %v53_v7 = vld [vmem:[%s965_s0 + $0xa] sm:$0x1]  ;;  %vm66_vm1 = vcmask 1041409   ;;  %vm81_vm2 = vcmask 261120  }
  0x13   :  { %686 = vmatprep.mubr.msk.bf16.mxu0 %vm818_vm0, %v817_v1  ;;  %694 = vmatprep.mubr.msk.bf16.mxu1 %vm818_vm0, %v817_v1  ;;  %v52_v6 = vld [vmem:[%s965_s0 + $0x2] sm:$0x1]  ;;  %v44_v8 = vld [vmem:[%s965_s0 + $0x1] sm:$0x1]  ;;  %v55_v10 = vpack.c.bf16 %v53_v7, %v53_v7  ;;  %v45_v11 = vld [vmem:[%s965_s0 + $0x9] sm:$0x1] }
  0x14   :  { %683 = vmatpush3.bf16.msra.mxu0 %v752_v2  ;;  %691 = vmatpush3.bf16.msra.mxu1 %v753_v3  ;;  %v54_v9 = vpack.c.bf16 %v52_v6, %v52_v6  ;;  %v46_v12 = vpack.c.bf16 %v44_v8, %v44_v8  ;;  %v47_v13 = vpack.c.bf16 %v45_v11, %v45_v11  ;;  %v187_v19 = vld [vmem:[%s965_s0 + $0x3] sm:$0x1]  ;;  %v188_v20 = vld [vmem:[%s965_s0 + $0xb] sm:$0x1]  ;;  %v259_v25 = vld [vmem:[%s965_s0 + $0x4] sm:$0x1] }
  0x15   :  { %684 = vmatprep.subr.bf16.mxu0 %v817_v1  ;;  %692 = vmatprep.subr.bf16.mxu1 %v817_v1  ;;  %v64_v15 = vunpack.c.l.b16 %v55_v10  ;;  %v756_v22 = vld [vmem:[#allocation3 + $0x28] sm:$0xff]   ;;  %v189_v23 = vpack.c.bf16 %v187_v19, %v187_v19  ;;  %v190_v24 = vpack.c.bf16 %v188_v20, %v188_v20  ;;  %v261_v28 = vpack.c.bf16 %v259_v25, %v259_v25  ;;  %v757_v32 = vld [vmem:[#allocation3 + $0x38] sm:$0xff]   ;;  %v758_v38 = vld [vmem:[#allocation3 + $0x20] sm:$0xff]  }
  0x16   :  { %v63_v14 = vunpack.c.l.b16 %v54_v9  ;;  %v127_v16 = vunpack.c.l.b16 %v46_v12  ;;  %v128_v17 = vunpack.c.l.b16 %v47_v13  ;;  %v260_v26 = vld [vmem:[%s965_s0 + $0xc] sm:$0x1]  ;;  %v331_v40 = vld [vmem:[%s965_s0 + $0x5] sm:$0x1]  ;;  %v759_v41 = vld [vmem:[#allocation3 + $0x30] sm:$0xff]   ;;  %vm564_vm3 = vcmask 130048  }
  0x17   :  { %v65_v18 = vrot.slane %v64_v15, 7  ;;  %v262_v29 = vpack.c.bf16 %v260_v26, %v260_v26  ;;  %v198_v33 = vunpack.c.l.b16 %v189_v23  ;;  %v199_v34 = vunpack.c.l.b16 %v190_v24  ;;  %v332_v43 = vld [vmem:[%s965_s0 + $0xd] sm:$0x1]  ;;  %v403_v45 = vld [vmem:[%s965_s0 + $0x6] sm:$0x1]  ;;  %v761_v58 = vld [vmem:[#allocation3 + $0x58] sm:$0xff]  }
  0x18   :  { %685 = vmatpush3.bf16.msra.mxu0 %v754_v4  ;;  %693 = vmatpush3.bf16.msra.mxu1 %v755_v5  ;;  %v129_v21 = vrot.slane %v128_v17, 7  ;;  %v270_v36 = vunpack.c.l.b16 %v261_v28  ;;  %v333_v44 = vpack.c.bf16 %v331_v40, %v331_v40  ;;  %v334_v47 = vpack.c.bf16 %v332_v43, %v332_v43  ;;  %v404_v48 = vld [vmem:[%s965_s0 + $0xe] sm:$0x1]  ;;  %v762_v62 = vld [vmem:[#allocation3 + $0x40] sm:$0xff]   ;;  %v763_v0 = vld [vmem:[#allocation3 + $0x50] sm:$0xff]  }
  0x19   :  { %698 = vmatprep.subr.bf16.mxu0 %v817_v1  ;;  %706 = vmatprep.subr.bf16.mxu1 %v817_v1  ;;  %v67_v27 = vsel %vm66_vm1, %v65_v18, %v63_v14  ;;  %v271_v37 = vunpack.c.l.b16 %v262_v29  ;;  %v200_v39 = vrot.slane %v199_v34, 7  ;;  %v405_v49 = vpack.c.bf16 %v403_v45, %v403_v45  ;;  %v760_v55 = vld [vmem:[#allocation3 + $0x48] sm:$0xff]   ;;  %v765_v6 = vld [vmem:[%s968_s3] sm:$0xff]  }
  0x1a   :  { %v68_v30 = vpack.c.b16 %v67_v27, %v67_v27  ;;  %v130_v31 = vsel %vm66_vm1, %v129_v21, %v127_v16  ;;  %v406_v51 = vpack.c.bf16 %v404_v48, %v404_v48  ;;  %v343_v53 = vunpack.c.l.b16 %v334_v47  ;;  %v764_v5 = vld [vmem:[%s968_s3 + $0x8] sm:$0xff]   ;;  %v652_v28 = vld [vmem:[%s967_s2] ss:$0 sm:$0xff] }
  0x1b   :  { %v131_v35 = vpack.c.b16 %v130_v31, %v130_v31  ;;  %v272_v42 = vrot.slane %v271_v37, 7  ;;  %v201_v46 = vsel %vm66_vm1, %v200_v39, %v198_v33  ;;  %v342_v56 = vunpack.c.l.b16 %v333_v44  ;;  %v554_v39 = vld [vmem:[#allocation2] sm:$0x1] }
  0x1c   :  { %687 = vmatmul.mubr.msk.bf16.vlgmr.msra.gmra.mxu0 %vm81_vm2, %v68_v30  ;;  %v202_v52 = vpack.c.b16 %v201_v46, %v201_v46  ;;  %v415_v57 = vunpack.c.l.b16 %v406_v51  ;;  %v344_v59 = vrot.slane %v343_v53, 7  ;;  %v414_v60 = vunpack.c.l.b16 %v405_v49 }
  0x1d   :  { %695 = vmatmul.mubr.msk.bf16.vlgmr.msra.gmra.mxu1 %vm81_vm2, %v131_v35  ;;  %699 = vmatpush3.bf16.msra.mxu0 %v756_v22  ;;  %v273_v50 = vsel %vm66_vm1, %v272_v42, %v270_v36  ;;  %v819_v40 = vmov 0   ;;  %v560_v51 = vlaneseq  ;;  %vm617_vm4 = vcmask 8192  }
  0x1e   :  { %707 = vmatpush3.bf16.msra.mxu1 %v757_v32  ;;  %700 = vmatprep.subr.bf16.mxu0 %v817_v1  ;;  %v274_v54 = vpack.c.b16 %v273_v50, %v273_v50  ;;  %v416_v61 = vrot.slane %v415_v57, 7  ;;  %v345_v63 = vsel %vm66_vm1, %v344_v59, %v342_v56  ;;  %v552_v50 = vld [vmem:[%s970_s5] sm:$0x1] }
  0x1f   :  { %708 = vmatprep.subr.bf16.mxu1 %v817_v1  ;;  %702 = vmatprep.mubr.msk.bf16.mxu0 %vm818_vm0, %v817_v1  ;;  %v346_v3 = vpack.c.b16 %v345_v63, %v345_v63 }
  0x20   :  { %710 = vmatprep.mubr.msk.bf16.mxu1 %vm818_vm0, %v817_v1  ;;  %v417_v2 = vsel %vm66_vm1, %v416_v61, %v414_v60  ;;  %751 = vset.pattern.permute.xlu0 %v819_v40 }
  0x21   :  { %701 = vmatpush3.bf16.msra.mxu0 %v758_v38  ;;  %v418_v4 = vpack.c.b16 %v417_v2, %v417_v2  ;;  %557 = vperm.xlu0 %751, %v554_v39  }
  0x22   :  { %709 = vmatpush3.bf16.msra.mxu1 %v759_v41  ;;  %714 = vmatprep.subr.bf16.mxu0 %v817_v1  ;;  %v653_v41 = vld [vmem:[%s969_s4] ss:$0 sm:$0xff]  ;;  %s820_s4 = smov [#allocation6]  }
  0x23   :  { %722 = vmatprep.subr.bf16.mxu1 %v817_v1  ;;  %s625_s14 = sshll.u32 %s820_s4, 4  ;;  %s626_s14 = int_to_ptr.vmem [resolvable:$true] %s625_s14 }
  0x24   :  { %703 = vmatmul.mubr.msk.bf16.vlgmr.msra.gmra.mxu0 %vm81_vm2, %v202_v52  ;;  %v561_v52 = vshrl.u32 %v560_v51, 7  ;;  %s790_s5 = scalar_lea.vmem %s626_s14, 16  ;;  %s794_s15 = scalar_lea.vmem %s626_s14, 32 }
  0x25   :  { %711 = vmatmul.mubr.msk.bf16.vlgmr.msra.gmra.mxu1 %vm81_vm2, %v274_v54  ;;  %715 = vmatpush3.bf16.msra.mxu0 %v760_v55  ;;  %p791_p5 = scmp.ne.s32.totalorder %s626_s14, %s790_s5  ;;  %p795_p6 = scmp.lt.s32.totalorder %s626_s14, %s626_s14 }
  0x26   :  { %723 = vmatpush3.bf16.msra.mxu1 %v761_v58  ;;  %716 = vmatprep.subr.bf16.mxu0 %v817_v1  ;;  %v562_v53 = vsub.s32 0, %v561_v52  ;;  %p796_p7 = scmp.lt.s32.totalorder %s794_s15, %s790_s5 }
  0x27   :  { %724 = vmatprep.subr.bf16.mxu1 %v817_v1  ;;  %718 = vmatprep.mubr.msk.bf16.mxu0 %vm818_vm0, %v817_v1 }
  0x28   :  { %726 = vmatprep.mubr.msk.bf16.mxu1 %vm818_vm0, %v817_v1  ;;  %p797_p8 = por %p796_p7, %p795_p6 }
  0x29   :  { %717 = vmatpush3.bf16.msra.mxu0 %v762_v62 }
  0x2a   :  { %725 = vmatpush3.bf16.msra.mxu1 %v763_v0  ;;  %730 = vmatprep.subr.bf16.mxu0 %v817_v1  ;;  %p798_p9 = pnand %p797_p8, %p791_p5 }
  0x2b   :  { %738 = vmatprep.subr.bf16.mxu1 %v817_v1 }
  0x2c   :  { %719 = vmatmul.mubr.msk.bf16.vlgmr.msra.gmra.mxu0 %vm81_vm2, %v346_v3 }
  0x2d   :  { %727 = vmatmul.mubr.msk.bf16.vlgmr.msra.gmra.mxu1 %vm81_vm2, %v418_v4  ;;  %734 = vmatprep.mubr.msk.bf16.mxu0 %vm818_vm0, %v817_v1 }
  0x2e   :  { %740 = vmatprep.mubr.msk.bf16.mxu1 %vm818_vm0, %v817_v1  ;;  %731 = vmatpush3.bf16.msra.mxu0 %v764_v5 }
  0x2f   :  { %732 = vmatprep.subr.bf16.mxu0 %v817_v1 }
  0x32   :  { %733 = vmatpush3.bf16.msra.mxu0 %v765_v6 }
  0x9c   :  { %v558_v54 = vpop.permute.xlu0 %557 }
  0x9d   :  { %v563_v55 = vrot.slane %v558_v54, %v562_v53 }
  0xdc   :  { %v119_v7 = vpop.f32.mrf.mxu0 }
  0xdd   :  { %v181_v8 = vpop.f32.mrf.mxu1 }
  0xde   :  { %v688_v9 = vpop.f32.mrf.mxu0  ;;  %v182_v16 = vadd.f32 %v181_v8, %v119_v7 }
  0xdf   :  { %v696_v10 = vpop.f32.mrf.mxu1 }
  0xe0   :  { %v122_v11 = vpop.f32.mrf.mxu0 }
  0xe1   :  { %v184_v12 = vpop.f32.mrf.mxu1 }
  0xe2   :  { %v689_v13 = vpop.f32.mrf.mxu0 }
  0xe3   :  { %v697_v14 = vpop.f32.mrf.mxu1 }
  0xe4   :  { %v252_v15 = vpop.f32.mrf.mxu0 }
  0xe5   :  { %v324_v17 = vpop.f32.mrf.mxu1  ;;  %v258_v19 = vadd.f32 %v252_v15, %v182_v16 }
  0xe6   :  { %v704_v18 = vpop.f32.mrf.mxu0 }
  0xe7   :  { %v712_v20 = vpop.f32.mrf.mxu1  ;;  %v330_v23 = vadd.f32 %v324_v17, %v258_v19 }
  0xe8   :  { %v255_v1 = vpop.f32.mrf.mxu0 }
  0xe9   :  { %v327_v21 = vpop.f32.mrf.mxu1 }
  0xea   :  { %v705_v22 = vpop.f32.mrf.mxu0 }
  0xeb   :  { %v713_v24 = vpop.f32.mrf.mxu1 }
  0xec   :  { %v396_v25 = vpop.f32.mrf.mxu0 }
  0xed   :  { %v402_v26 = vadd.f32 %v396_v25, %v330_v23  ;;  %v468_v27 = vpop.f32.mrf.mxu1 }
  0xee   :  { %v720_v29 = vpop.f32.mrf.mxu0 }
  0xef   :  { %v474_v30 = vadd.f32 %v468_v27, %v402_v26  ;;  %v728_v31 = vpop.f32.mrf.mxu1 }
  0xf0   :  { %v399_v32 = vpop.f32.mrf.mxu0 }
  0xf1   :  { %v482_v33 = vadd.f32 %v652_v28, %v474_v30  ;;  %v471_v34 = vpop.f32.mrf.mxu1 }
  0xf2   :  { %v721_v35 = vpop.f32.mrf.mxu0 }
  0xf3   :  { %v483_v36 = vmax.f32 %v482_v33, 0.0  ;;  %v729_v37 = vpop.f32.mrf.mxu1 }
  0xf5   :  { %v484_v38 = vpack.c.bf16 %v483_v36, %v483_v36 }
  0xf7   :  { %735 = vmatmul.mubr.msk.bf16.vlgmr.msra.gmra.mxu0 %vm81_vm2, %v484_v38 }
 0x1b7   :  { %v545_v42 = vpop.f32.mrf.mxu0 }
 0x1b8   :  { %v546_v43 = vadd.f32 %v653_v41, %v545_v42 }
 0x1b9   :  { %v736_v44 = vpop.f32.mrf.mxu0 }
 0x1ba   :  { %v551_v45 = vmax.f32 %v546_v43, 0.0 }
 0x1bb   :  { %v548_v46 = vpop.f32.mrf.mxu0 }
 0x1bc   :  { %v553_v47 = vpack.c.bf16 %v551_v45, %v551_v45 }
 0x1bd   :  { %v737_v48 = vpop.f32.mrf.mxu0 }
 0x1be   :  { %v569_v49 = vsel %vm564_vm3, %v553_v47, 0 }
 0x1bf   :  { %739 = vmatpush3.bf16.xpose.msra.mxu1 %v569_v49 }
 0x1c6   :  { %741 = vmatmul.mubr.msk.bf16.vlgmr.msra.gmra.mxu1 %vm564_vm3, %v552_v50 }
 0x286   :  { %v605_v56 = vpop.f32.mrf.mxu1 }
 0x287   :  { %v606_v57 = vadd.f32 %v605_v56, %v563_v55 }
 0x288   :  { %v742_v58 = vpop.f32.mrf.mxu1 }
 0x289   :  { %v658_v59 = vmul.f32 -1.442695, %v606_v57 }
 0x28a   :  { %v608_v60 = vpop.f32.mrf.mxu1 }
 0x28b   :  { %766 = vpow2.f32 %v658_v59 }
 0x28c   :  { %v743_v61 = vpop.f32.mrf.mxu1 }
 0x298   :  { %v767_v62 = vpop.eup %766 }
 0x299   :  { %v614_v63 = vadd.f32 1.0, %v767_v62 }
 0x29b   :  { %768 = vrcp.f32 %v614_v63 }
 0x2a8   :  { %v769_v0 = vpop.eup %768 }
 0x2a9   :  { %618 = vst.msk [vmem:[#allocation6] sm:$0x1] %vm617_vm4, %v769_v0 }
 0x2aa   :  { %801 = shalt.err (!%p798_p9)
}
 0x2ab   :  { %628 = dma.vmem_to_hbm [thread:$0]  %s626_s14, 16, %s972_s7, [#allocation5]  }
 0x2ac   :  { %812 = dma.done.wait [#allocation5], 16  }
 0x2ad   :  { %813 = vsyncadd [#allocation5], 4294967280 }
 0x2ae   :  { %632 = vsyncpa [#allocation4], 1 }
 0x2af   :  { %633 = vsyncpa [#allocation5], 1 }

</bundles_post_ra>
